<compile_context>
chip_gen: v5e
topology: v5e:2x2
jax: 0.10.0
libtpu: 0.0.40
codegen_flags: <defaults>
</compile_context>

<pallas_src>
import jax
import jax.numpy as jnp
from jax import lax
from jax.experimental import pallas as pl
from jax.experimental.pallas import tpu as pltpu


def _round_up(a: int, b: int) -> int:
    return ((a + b - 1) // b) * b


def _pack_factor(n: int, d: int) -> int:
    """Largest G with G*d <= 128 and G | n (so (n,d)->(n//G,G*d) is a free reshape)."""
    if d >= 128 or n == 0:
        return 1
    g = max(1, 128 // d)
    while g > 1 and n % g:
        g -= 1
    return g


def _ridge_matvec_kernel(xp_ref, bmat_ref, b0_ref, o_ref):
    # xp_ref:   (tile_p, G*d) VMEM tile; packed row r holds samples r*G .. r*G+G-1
    # bmat_ref: (G, G*d)      VMEM block-diagonal replication of beta (no intercept)
    # b0_ref:   (1, 1)        SMEM intercept scalar (0.0 when fit_intercept_3d=False)
    # o_ref:    (G, tile_p)   lane-dense output block; o[g, r] = y[(r + tile off)*G + g]
    acc = lax.dot_general(
        bmat_ref[...], xp_ref[...],
        dimension_numbers=(((1,), (1,)), ((), ())),   # contract G*d axis (q @ k^T form)
        preferred_element_type=jnp.float32,
    )
    o_ref[...] = acc + b0_ref[0, 0]


def ridge_forward_pallas(x, beta, *, fit_intercept_3d=True, tile_n=32768):
    """Pallas implementation of TwoStageAggregateRidgeRegression.forward.

    Args:
      x: (n_samples, d) covariates (f32 or bf16).
      beta: (d + 1,) if fit_intercept_3d else (d,) fitted coefficients (last
        entry is the intercept when fit_intercept_3d=True).
      fit_intercept_3d: matches the module flag (ones-column padding semantics).
      tile_n: requested samples per grid step (capped by a VMEM budget).

    Returns:
      (n_samples,) float32 predictions, identical to x_padded @ beta.
    """
    n, d = x.shape

    if fit_intercept_3d:
        assert beta.shape == (d + 1,), (beta.shape, d)
        weights = beta[:-1]
        intercept = beta[-1].astype(jnp.float32)
    else:
        assert beta.shape == (d,), (beta.shape, d)
        weights = beta
        intercept = jnp.zeros((), jnp.float32)

    itemsize = jnp.dtype(x.dtype).itemsize

    # ---- pack G samples per packed row so the x tile is lane-dense in VMEM ----
    G = _pack_factor(n, d)
    dp = G * d
    np_rows = n // G                         # exact: G | n
    xp = x.reshape(np_rows, dp)              # zero-copy view of contiguous x

    # Block-diagonal replication of beta: bmat[g, g*d:(g+1)*d] = weights.
    # NOTE: cast to x.dtype for the MXU feed; for bf16 x this rounds the f32
    # weights to bf16 (accumulation stays f32).
    w = weights.astype(x.dtype)
    bmat = jnp.kron(jnp.eye(G, dtype=x.dtype), w[None, :])   # (G, G*d)
    b0 = intercept.reshape(1, 1)                             # SMEM scalar

    # ---- padding-aware tile sizing ((8,128) VMEM layout, double-buffered) ----
    lane_pad = _round_up(dp, 128)
    x_row_bytes = lane_pad * itemsize                  # per packed row, x tile
    o_row_bytes = _round_up(G, 8) * 4                  # per packed row, f32 out tile
    bytes_per_prow = x_row_bytes + o_row_bytes
    budget = 20 * 1024 * 1024                          # double-buffered working-set target
    max_tile_p = max(128, (budget // (2 * bytes_per_prow)) // 128 * 128)

    tile_p = min(max_tile_p, max(128, _round_up(pl.cdiv(max(int(tile_n), 1), G), 128)))
    if np_rows > 256:
        # Keep >= 2 grid steps so ("parallel",) can shard row tiles over v7x's 2 TCs.
        tile_p = min(tile_p, max(128, _round_up(pl.cdiv(np_rows, 2), 128)))
    tile_p = min(tile_p, np_rows)            # tiny-n case: block == full array dim
    num_tiles = pl.cdiv(np_rows, tile_p)

    bmat_bytes = _round_up(G, 8) * lane_pad * itemsize
    vmem_limit = int(2 * tile_p * bytes_per_prow + 2 * bmat_bytes + 4 * 1024 * 1024)

    cost = pl.CostEstimate(
        flops=2 * n * d,
        bytes_accessed=n * d * itemsize + n * 4 + G * dp * itemsize,
        transcendentals=0,
    )

    out = pl.pallas_call(
        _ridge_matvec_kernel,
        out_shape=jax.ShapeDtypeStruct((num_tiles, G, tile_p), jnp.float32),
        grid_spec=pltpu.PrefetchScalarGridSpec(
            num_scalar_prefetch=0,
            grid=(num_tiles,),
            in_specs=[
                pl.BlockSpec((tile_p, dp), lambda i: (i, 0)),          # streamed x tiles
                pl.BlockSpec((G, dp), lambda i: (0, 0)),               # resident beta block
                pl.BlockSpec(memory_space=pltpu.MemorySpace.SMEM),     # intercept scalar
            ],
            out_specs=pl.BlockSpec((None, G, tile_p), lambda i: (i, 0, 0)),
        ),
        compiler_params=pltpu.CompilerParams(
            dimension_semantics=("parallel",),
            vmem_limit_bytes=vmem_limit,
        ),
        cost_estimate=cost,
    )(xp, bmat, b0)

    # Un-permute (num_tiles, G, tile_p) -> sample order.  Ragged tail: packed
    # rows beyond np_rows in the last (partial) x tile hold garbage, but every
    # output element depends only on its own input row, so that garbage lands
    # at flat positions >= n and is sliced off here.  (Do NOT rely on this if
    # a future variant introduces any cross-row reduction.)
    y = out.transpose(0, 2, 1).reshape(-1)[:n]
    return y


if __name__ == "__main__":
    # Small deterministic setup consistent with the module:
    #   x: (n_samples, covariate_dimensionality) = (128, 31)
    #   fit_intercept_3d=True -> beta has d_3d = 32 entries (last is intercept).
    key = jax.random.PRNGKey(0)
    kx, kb = jax.random.split(key)

    n_samples, cov_dim = 128, 31
    x = jax.random.normal(kx, (n_samples, cov_dim), dtype=jnp.float32)
    # Deterministic "fitted" beta buffer (synthetic; no checkpoint load).
    # TODO(synk): the two-stage `fit` (gpytorch.inv_matmul Cholesky solves on
    # aggregated covariates) is training-time setup, not part of forward, so it
    # is not ported to Pallas.
    beta = jax.random.normal(kb, (cov_dim + 1,), dtype=jnp.float32)

    fwd = jax.jit(ridge_forward_pallas, static_argnames=("fit_intercept_3d", "tile_n"))

    y = jax.block_until_ready(fwd(x, beta, fit_intercept_3d=True))
    x_pad = jnp.concatenate([x, jnp.ones((n_samples, 1), jnp.float32)], axis=-1)
    y_ref = x_pad @ beta
    assert y.shape == (n_samples,)
    assert jnp.allclose(y, y_ref, atol=1e-4, rtol=1e-4), float(jnp.max(jnp.abs(y - y_ref)))

    # Ragged multi-tile grid (packed rows not divisible by the tile): exercises
    # the packed path with a partial last block and grid > 1.
    n2 = 1000
    x2 = jax.random.normal(kx, (n2, cov_dim), dtype=jnp.float32)
    y2 = jax.block_until_ready(fwd(x2, beta, fit_intercept_3d=True, tile_n=512))
    x2_pad = jnp.concatenate([x2, jnp.ones((n2, 1), jnp.float32)], axis=-1)
    assert y2.shape == (n2,)
    assert jnp.allclose(y2, x2_pad @ beta, atol=1e-4, rtol=1e-4)

    # No-intercept path and the G == 1 (unpacked) fallback (prime n).
    n3 = 101
    x3 = jax.random.normal(kb, (n3, cov_dim), dtype=jnp.float32)
    beta3 = beta[:-1]
    y3 = jax.block_until_ready(fwd(x3, beta3, fit_intercept_3d=False))
    assert y3.shape == (n3,)
    assert jnp.allclose(y3, x3 @ beta3, atol=1e-4, rtol=1e-4)

    print("KERNEL_OK")
</pallas_src>

<mosaic_0001>
module attributes {stable_mosaic.version = 11 : i64} {
  func.func @_ridge_matvec_kernel(%arg0: i32, %arg1: memref<32x124xf32, #tpu.memory_space<vmem>>, %arg2: memref<4x124xf32, #tpu.memory_space<vmem>>, %arg3: memref<1x1xf32, #tpu.memory_space<smem>>, %arg4: memref<1x4x32xf32, #tpu.memory_space<vmem>>) attributes {dimension_semantics = [#tpu.dimension_semantics<parallel>], iteration_bounds = array<i64: 1>, scalar_prefetch = 0 : i64, scratch_operands = 0 : i64, tpu.core_type = #tpu.core_type<tc>, window_params = [{transform_indices = @transform_0, window_bounds = array<i64: 32, 124>}, {pipeline_mode = #tpu.pipeline_mode<synchronous>, transform_indices = @transform_1, window_bounds = array<i64: 4, 124>}, {transform_indices = @transform_2, window_bounds = array<i64: 1, 1>}, {transform_indices = @transform_3, window_bounds = array<i64: 1, 4, 32>}]} {
    %c0 = arith.constant 0 : index
    %c0_0 = arith.constant 0 : index
    %0 = vector.load %arg2[%c0, %c0_0] : memref<4x124xf32, #tpu.memory_space<vmem>>, vector<4x124xf32>
    %c0_1 = arith.constant 0 : index
    %c0_2 = arith.constant 0 : index
    %1 = vector.load %arg1[%c0_1, %c0_2] : memref<32x124xf32, #tpu.memory_space<vmem>>, vector<32x124xf32>
    %cst = arith.constant dense<0.000000e+00> : vector<4x32xf32>
    %2 = tpu.matmul %0, %1, %cst {dimension_numbers = #tpu.dot_dimension_numbers<[1], [1], [0], [0], [0, 0, 1, 0], [], []>} : vector<4x124xf32>, vector<32x124xf32>, vector<4x32xf32> -> vector<4x32xf32>
    %c0_3 = arith.constant 0 : index
    %c0_4 = arith.constant 0 : index
    %3 = memref.load %arg3[%c0_3, %c0_4] : memref<1x1xf32, #tpu.memory_space<smem>>
    %4 = vector.broadcast %3 : f32 to vector<4x32xf32>
    %5 = arith.addf %2, %4 : vector<4x32xf32>
    %c0_5 = arith.constant 0 : index
    %c0_6 = arith.constant 0 : index
    %c0_7 = arith.constant 0 : index
    %6 = vector.load %arg4[%c0_5, %c0_6, %c0_7] : memref<1x4x32xf32, #tpu.memory_space<vmem>>, vector<1x4x32xf32>
    %7 = vector.shape_cast %6 : vector<1x4x32xf32> to vector<4x32xf32>
    %8 = vector.shape_cast %5 : vector<4x32xf32> to vector<1x4x32xf32>
    tpu.vector_store %arg4[%c0_5, %c0_6, %c0_7], %8 {strides = array<i32>} : memref<1x4x32xf32, #tpu.memory_space<vmem>>, vector<1x4x32xf32>,
    return
  }
  func.func @transform_0(%arg0: i32) -> (i32, i32) {
    %c0_i32 = arith.constant 0 : i32
    %c0_i32_0 = arith.constant 0 : i32
    return %arg0, %c0_i32 : i32, i32
  }
  func.func @transform_1(%arg0: i32) -> (i32, i32) {
    %c0_i32 = arith.constant 0 : i32
    %c0_i32_0 = arith.constant 0 : i32
    %c0_i32_1 = arith.constant 0 : i32
    return %c0_i32, %c0_i32_0 : i32, i32
  }
  func.func @transform_2(%arg0: i32) -> (i32, i32) {
    %c0_i32 = arith.constant 0 : i32
    %c0_i32_0 = arith.constant 0 : i32
    %c0_i32_1 = arith.constant 0 : i32
    return %c0_i32, %c0_i32_0 : i32, i32
  }
  func.func @transform_3(%arg0: i32) -> (i32, i32, i32) {
    %c0_i32 = arith.constant 0 : i32
    %c0_i32_0 = arith.constant 0 : i32
    %c0_i32_1 = arith.constant 0 : i32
    return %arg0, %c0_i32, %c0_i32_0 : i32, i32, i32
  }
}

</mosaic_0001>

<bundles_post_ra>
// kernel: ridge_forward_pallas.1
= control target key start
LH: loop header
LB: loop body
LE: loop exit
PB: predicated region body
PF: predicated region fallthrough
CT: control target
= control target key end

     0   :  { %vm22_vm0 = vcmask 1014784   ;;  %vm58_vm1 = vcmask 257024   ;;  %s110_s0 = inlined_call_operand.vmem [shape: f32[32,124], index: 0, kind: input, shape index: {}]   ;;  %s111_s1 = inlined_call_operand.vmem [shape: f32[4,124], index: 1, kind: input, shape index: {}]   ;;  %s112_s2 = inlined_call_operand.<no memory space> [shape: f32[1,1], index: 2, kind: input, shape index: {}]   ;;  %s113_s3 = inlined_call_operand.vmem [shape: f32[1,4,32], index: 3, kind: output, shape index: {}]  }
   0x1   :  { %v19_v0 = vld [vmem:[%s110_s0 + $0x18] sm:$0xff]  ;;  %v18_v1 = vld [vmem:[%s110_s0 + $0x10] sm:$0xff]  ;;  %v17_v2 = vld [vmem:[%s110_s0 + $0x8] sm:$0xff]  ;;  %v21_v5 = vstv %s112_s2 }
   0x2   :  { %64 = vmatpush.xpose.msk.msra.mxu0 %vm22_vm0, %v19_v0  ;;  %v16_v3 = vld [vmem:[%s110_s0] sm:$0xff] }
   0x3   :  { %v15_v4 = vld [vmem:[%s111_s1] sm:$0xf] }
   0x6   :  { %65 = vmatpush.xpose.msk.msra.mxu0 %vm22_vm0, %v18_v1 }
   0xa   :  { %66 = vmatpush.xpose.msk.msra.mxu0 %vm22_vm0, %v17_v2 }
   0xe   :  { %67 = vmatpush.xpose.msk.msra.mxu0 %vm22_vm0, %v16_v3 }
  0x11   :  { %68 = vmatmul.msk.f32.vlgmr.msra.gmra.mxu0 %vm22_vm0, %v15_v4 }
  0x8e   :  { %v55_v6 = vpop.f32.mrf.mxu0 }
  0x8f   :  { %v56_v7 = vadd.f32 %v55_v6, %v21_v5 }
  0x91   :  { %59 = vst.msk [vmem:[%s113_s3] sm:$0xf] %vm58_vm1, %v56_v7 }

</bundles_post_ra>
